<compile_context>
chip_gen: v7x
topology: tpu7x:2x2x1
jax: 0.10.0
libtpu: 0.0.40
codegen_flags: <defaults>
</compile_context>

<pallas_src>
import jax
import jax.numpy as jnp
from jax.experimental import pallas as pl
from jax.experimental.pallas import tpu as pltpu


def _round_up(x: int, m: int) -> int:
    return ((x + m - 1) // m) * m


def _vmem_limit_bytes() -> int:
    """Generation-aware VMEM limit: ~75% of physical per-core VMEM.

    v5e / v6e: 128 MiB physical -> ~96 MiB limit (well above the 16 / 32 MiB
    default scoped limits).  v7x: 64 MiB physical -> ~48 MiB limit.  Falls back
    to a value safe on every generation if the query is unavailable.
    """
    try:
        cap = int(pltpu.get_tpu_info().vmem_capacity_bytes)
    except Exception:
        cap = 64 * 1024 * 1024  # conservative (v7x per-TensorCore physical)
    return max(16 * 1024 * 1024, (cap * 3) // 4)


# ---------------------------------------------------------------------------
# Parameter preparation (run ONCE per model, not per forward call).
# ---------------------------------------------------------------------------
def fuse_linear_chain(weights, biases):
    """Fold a chain of Linear layers (no nonlinearity between them) into one.

    weights[i]: [in_i, out_i]  (i.e. already transposed from torch's [out, in])
    biases[i]:  [out_i]
    Returns (W_fused [in_0, out_last], b_fused [out_last]) in float32.
    """
    w = jnp.asarray(weights[0], jnp.float32)
    b = jnp.asarray(biases[0], jnp.float32)
    for wi, bi in zip(weights[1:], biases[1:]):
        wi = jnp.asarray(wi, jnp.float32)
        bi = jnp.asarray(bi, jnp.float32)
        w = w @ wi
        b = b @ wi + bi
    return w, b


def prepare_head_params(weights, biases, compute_dtype=jnp.float32):
    """Fuse + cast once.  Cache the result; pass it to every forward call.

    compute_dtype=jnp.bfloat16 halves HBM traffic for the X/weight streams
    (f32 accumulation on the MXU keeps the error small) — recommended on v5e.
    """
    w_fused, b_fused = fuse_linear_chain(weights, biases)
    w_c = w_fused.astype(compute_dtype)            # MXU operand dtype
    b_c = b_fused.reshape(1, -1).astype(jnp.float32)  # bias stays f32
    return w_c, b_c


# ---------------------------------------------------------------------------
# Pallas kernel
# ---------------------------------------------------------------------------
def _fused_head_kernel(x_ref, w_ref, b_ref, o_ref):
    # One MXU matmul per batch tile, f32 accumulation, bias add on the VPU.
    acc = jnp.dot(x_ref[...], w_ref[...], preferred_element_type=jnp.float32)
    o_ref[...] = (acc + b_ref[...]).astype(o_ref.dtype)


def text_classification_head_forward(x, w_fused, b_fused, *, batch_tile=1024):
    """logits = X @ W_fused + b_fused  (== the original Linear chain).

    x:       [B, H]  pooled ("per_sequence") features
    w_fused: [H, L]  fused weight (from prepare_head_params)
    b_fused: [1, L]  fused bias, float32
    returns logits [B, L] in x.dtype.
    """
    B, H = x.shape
    Hw, L = w_fused.shape
    assert Hw == H, "fused weight / input hidden-dim mismatch"
    cdt = w_fused.dtype
    out_dtype = x.dtype

    vmem_limit = _vmem_limit_bytes()
    budget = int(vmem_limit * 0.85)  # headroom for compiler scratch

    # Footprint model matching the actual buffering: X and logits are
    # double-buffered (pipelined over the batch grid), the fused weight/bias
    # get the default 2 buffers but are tiny after fusion, and the f32 matmul
    # result lives once per tile before the cast.
    x_item = jnp.dtype(cdt).itemsize
    o_item = jnp.dtype(out_dtype).itemsize

    def _footprint(tb):
        return (2 * tb * H * x_item                       # X tiles (2 bufs)
                + 2 * tb * L * o_item                     # logit tiles (2 bufs)
                + 2 * (H * L * x_item + L * 4)            # resident W, b (2 bufs)
                + tb * L * 4)                             # f32 acc before cast

    if B <= 8:
        TB = B                                            # full-dim batch block
    else:
        TB = min(_round_up(batch_tile, 8), _round_up(B, 8))
        while TB > 8 and _footprint(TB) > budget:
            TB = max(8, _round_up(TB // 2, 8))
    # TODO(synk): if H*L itself ever exceeded the VMEM budget (huge hidden *
    # huge label count), a K-tiled variant with an f32 accumulator would be
    # needed; classification heads never get close, so it is omitted.

    grid = (pl.cdiv(B, TB),)

    # Cast X only if the compute dtype differs (no-op / fused by XLA otherwise).
    x_c = x if x.dtype == cdt else x.astype(cdt)

    return pl.pallas_call(
        _fused_head_kernel,
        out_shape=jax.ShapeDtypeStruct((B, L), out_dtype),
        grid=grid,
        in_specs=[
            pl.BlockSpec((TB, H), lambda i: (i, 0)),   # X: pipelined over batch
            pl.BlockSpec((H, L), lambda i: (0, 0)),    # W_fused: VMEM-resident
            pl.BlockSpec((1, L), lambda i: (0, 0)),    # b_fused: VMEM-resident
        ],
        out_specs=pl.BlockSpec((TB, L), lambda i: (i, 0)),
        compiler_params=pltpu.CompilerParams(
            dimension_semantics=("parallel",),         # batch axis independent
            vmem_limit_bytes=vmem_limit,
        ),
    )(x_c, w_fused, b_fused)


def reference_forward(x, w1, b1, w2, b2):
    h = x @ w1 + b1
    return h @ w2 + b2


if __name__ == "__main__":
    # Small shapes consistent with the module:
    #   layer_dims = [hidden=32, inter=16, num_labels=8], batch=2
    batch, hidden, inter, num_labels = 2, 32, 16, 8

    key = jax.random.PRNGKey(0)
    k_x, k_w1, k_b1, k_w2, k_b2, k_x2 = jax.random.split(key, 6)

    x = jax.random.normal(k_x, (batch, hidden), dtype=jnp.float32)
    # Deterministic synthetic parameters (nn.Linear-like uniform init scale).
    w1 = jax.random.uniform(k_w1, (hidden, inter), dtype=jnp.float32,
                            minval=-1.0 / hidden ** 0.5, maxval=1.0 / hidden ** 0.5)
    b1 = jax.random.uniform(k_b1, (inter,), dtype=jnp.float32,
                            minval=-1.0 / hidden ** 0.5, maxval=1.0 / hidden ** 0.5)
    w2 = jax.random.uniform(k_w2, (inter, num_labels), dtype=jnp.float32,
                            minval=-1.0 / inter ** 0.5, maxval=1.0 / inter ** 0.5)
    b2 = jax.random.uniform(k_b2, (num_labels,), dtype=jnp.float32,
                            minval=-1.0 / inter ** 0.5, maxval=1.0 / inter ** 0.5)

    ref = reference_forward(x, w1, b1, w2, b2)

    # --- f32 compute path: fused affine chain vs. sequential reference -------
    w_f32, b_f32 = prepare_head_params([w1, w2], [b1, b2], compute_dtype=jnp.float32)
    logits = text_classification_head_forward(x, w_f32, b_f32)
    jax.block_until_ready(logits)
    assert logits.shape == (batch, num_labels)
    assert jnp.allclose(logits, ref, atol=1e-4, rtol=1e-4), "f32 mismatch vs reference"

    # --- bf16 compute path (f32 accumulation) --------------------------------
    w_bf16, b_bf16 = prepare_head_params([w1, w2], [b1, b2], compute_dtype=jnp.bfloat16)
    logits_bf16 = text_classification_head_forward(x, w_bf16, b_bf16)
    jax.block_until_ready(logits_bf16)
    assert logits_bf16.shape == (batch, num_labels)
    assert jnp.allclose(logits_bf16, ref, atol=1e-1, rtol=1e-1), "bf16 mismatch vs reference"

    # --- batch-tiled path (grid > 1, partial trailing block) -----------------
    big_batch = 20
    x_big = jax.random.normal(k_x2, (big_batch, hidden), dtype=jnp.float32)
    ref_big = reference_forward(x_big, w1, b1, w2, b2)
    logits_big = text_classification_head_forward(x_big, w_f32, b_f32, batch_tile=8)
    jax.block_until_ready(logits_big)
    assert logits_big.shape == (big_batch, num_labels)
    assert jnp.allclose(logits_big, ref_big, atol=1e-4, rtol=1e-4), "tiled mismatch vs reference"

    # TODO(synk): logits_to_loss / logits_to_preds / logits_to_probs
    # (CrossEntropyLoss, softmax, argmax to label strings) are training /
    # inference utilities outside forward(); intentionally not kernelized.
    print("KERNEL_OK")
</pallas_src>

<mosaic_0001>
module attributes {stable_mosaic.version = 11 : i64} {
  func.func @_fused_head_kernel(%arg0: i32, %arg1: memref<2x32xf32, #tpu.memory_space<vmem>>, %arg2: memref<32x8xf32, #tpu.memory_space<vmem>>, %arg3: memref<1x8xf32, #tpu.memory_space<vmem>>, %arg4: memref<2x8xf32, #tpu.memory_space<vmem>>) attributes {dimension_semantics = [#tpu.dimension_semantics<parallel>], iteration_bounds = array<i64: 1>, scalar_prefetch = 0 : i64, scratch_operands = 0 : i64, tpu.core_type = #tpu.core_type<tc>, window_params = [{transform_indices = @transform_0, window_bounds = array<i64: 2, 32>}, {pipeline_mode = #tpu.pipeline_mode<synchronous>, transform_indices = @transform_1, window_bounds = array<i64: 32, 8>}, {pipeline_mode = #tpu.pipeline_mode<synchronous>, transform_indices = @transform_2, window_bounds = array<i64: 1, 8>}, {transform_indices = @transform_3, window_bounds = array<i64: 2, 8>}]} {
    %c0 = arith.constant 0 : index
    %c0_0 = arith.constant 0 : index
    %0 = vector.load %arg1[%c0, %c0_0] : memref<2x32xf32, #tpu.memory_space<vmem>>, vector<2x32xf32>
    %c0_1 = arith.constant 0 : index
    %c0_2 = arith.constant 0 : index
    %1 = vector.load %arg2[%c0_1, %c0_2] : memref<32x8xf32, #tpu.memory_space<vmem>>, vector<32x8xf32>
    %cst = arith.constant dense<0.000000e+00> : vector<2x8xf32>
    %2 = tpu.matmul %0, %1, %cst {dimension_numbers = #tpu.dot_dimension_numbers<[1], [0], [0], [1], [0, 0, 1, 1], [], []>} : vector<2x32xf32>, vector<32x8xf32>, vector<2x8xf32> -> vector<2x8xf32>
    %c0_3 = arith.constant 0 : index
    %c0_4 = arith.constant 0 : index
    %3 = vector.load %arg3[%c0_3, %c0_4] : memref<1x8xf32, #tpu.memory_space<vmem>>, vector<1x8xf32>
    %4 = vector.broadcast %3 : vector<1x8xf32> to vector<2x8xf32>
    %5 = arith.addf %2, %4 : vector<2x8xf32>
    %c0_5 = arith.constant 0 : index
    %c0_6 = arith.constant 0 : index
    %6 = vector.load %arg4[%c0_5, %c0_6] : memref<2x8xf32, #tpu.memory_space<vmem>>, vector<2x8xf32>
    tpu.vector_store %arg4[%c0_5, %c0_6], %5 {strides = array<i32>} : memref<2x8xf32, #tpu.memory_space<vmem>>, vector<2x8xf32>,
    return
  }
  func.func @transform_0(%arg0: i32) -> (i32, i32) {
    %c0_i32 = arith.constant 0 : i32
    %c0_i32_0 = arith.constant 0 : i32
    return %arg0, %c0_i32 : i32, i32
  }
  func.func @transform_1(%arg0: i32) -> (i32, i32) {
    %c0_i32 = arith.constant 0 : i32
    %c0_i32_0 = arith.constant 0 : i32
    %c0_i32_1 = arith.constant 0 : i32
    return %c0_i32, %c0_i32_0 : i32, i32
  }
  func.func @transform_2(%arg0: i32) -> (i32, i32) {
    %c0_i32 = arith.constant 0 : i32
    %c0_i32_0 = arith.constant 0 : i32
    %c0_i32_1 = arith.constant 0 : i32
    return %c0_i32, %c0_i32_0 : i32, i32
  }
  func.func @transform_3(%arg0: i32) -> (i32, i32) {
    %c0_i32 = arith.constant 0 : i32
    %c0_i32_0 = arith.constant 0 : i32
    return %arg0, %c0_i32 : i32, i32
  }
}

</mosaic_0001>

<bundles_post_ra>
// kernel: tpu_custom_call.1
= control target key start
LH: loop header
LB: loop body
LE: loop exit
PB: predicated region body
PF: predicated region fallthrough
CT: control target
= control target key end

     0   :  { %v169_v3 = vmov 0.0|0.0   ;;  %vm170_vm0 = vmmov 0   ;;  %v171_v6 = vmov 0.0   ;;  %s223_s0 = inlined_call_operand.vmem [shape: f32[2,32], index: 0, kind: input, shape index: {}]   ;;  %s224_s1 = inlined_call_operand.vmem [shape: f32[32,8], index: 1, kind: input, shape index: {}]   ;;  %s225_s2 = inlined_call_operand.vmem [shape: f32[1,8], index: 2, kind: input, shape index: {}]   ;;  %s226_s3 = inlined_call_operand.hbm [shape: f32[2,8], index: 3, kind: output, shape index: {}]  }
   0x1   :  { %v16_v0 = vld [vmem:[%s224_s1] sm:$0xff]  ;;  %v17_v1 = vld [vmem:[%s224_s1 + $0x8] sm:$0xff]  ;;  %v18_v2 = vld [vmem:[%s224_s1 + $0x10] sm:$0xff]  ;;  %135 = vmatprep.subr.bf16.mxu0 %v169_v3  ;;  %132 = vmatprep.mubr.msk.f32.mxu0 %vm170_vm0, %v171_v6 }
   0x2   :  { %v136_v4 = vpack.c.bf16 %v17_v1, %v16_v0  ;;  %v19_v5 = vld [vmem:[%s224_s1 + $0x18] sm:$0xff] }
   0x3   :  { %8 = vsyncpa [#allocation3], 0  ;;  %v139_v7 = vpack.c.bf16 %v19_v5, %v18_v2  ;;  %v15_v8 = vld [vmem:[%s223_s0] sm:$0x3]  ;;  %vm27_vm1 = vcmask 261120   ;;  %s172_s24 = smov [#allocation2]  }
   0x4   :  { %137 = vmatpush3.bf16.msra.mxu0 %v136_v4  ;;  %v117_v9 = vld [vmem:[%s225_s2] ss:$0 sm:$0xff]  ;;  %s109_s1 = sshll.u32 %s172_s24, 4  ;;  %vm101_vm2 = vcmask 58368   ;;  %s110_s1 = int_to_ptr.vmem [resolvable:$true] %s109_s1 }
   0x5   :  { %138 = vmatprep.subr.bf16.mxu0 %v169_v3  ;;  %s145_s25 = scalar_lea.vmem %s110_s1, 32  ;;  %p150_p1 = scmp.lt.s32.totalorder %s110_s1, %s110_s1 }
   0x6   :  { %p146_p0 = scmp.ne.s32.totalorder %s110_s1, %s145_s25  ;;  %p151_p2 = scmp.lt.s32.totalorder %s145_s25, %s145_s25 }
   0x8   :  { %140 = vmatpush3.bf16.msra.mxu0 %v139_v7  ;;  %p152_p3 = por %p151_p2, %p150_p1 }
   0xa   :  { %p153_p4 = pnand %p152_p3, %p146_p0 }
   0xb   :  { %133 = vmatmul.mubr.msk.f32.vlgmr.msra.gmra.mrb[0].mxu0 %vm27_vm1, %v15_v8 }
  0xde   :  { %v97_v10 = vpop.f32.mrb[0].mxu0 }
  0xdf   :  { %v98_v11 = vadd.f32 %v117_v9, %v97_v10  ;;  %v134_v12 = vpop.f32.mrb[1].mxu0 }
  0xe1   :  { %102 = vst.msk [vmem:[#allocation2] sm:$0x3] %vm101_vm2, %v98_v11 }
  0xe2   :  { %156 = shalt.err (!%p153_p4)
}
  0xe3   :  { %s157_s27 = scalar_lea.hbm %s226_s3, 32 }
  0xe4   :  { %p158_p5 = scmp.ne.s32.totalorder %s226_s3, %s157_s27  ;;  %p161_p6 = scmp.lt.u32.totalorder %s157_s27, %s226_s3 }
  0xe6   :  { %p163_p7 = pnand %p161_p6, %p158_p5 }
  0xe8   :  { %166 = shalt.err (!%p163_p7)
}
  0xe9   :  { %112 = dma.vmem_to_hbm [thread:$0]  %s110_s1, 32, %s226_s3, [#allocation3]  }
  0xea   :  { %167 = dma.done.wait [#allocation3], 32  }
  0xeb   :  { %168 = vsyncadd [#allocation3], 4294967264 }
  0xec   :  { %116 = vsyncpa [#allocation3], 1 }

</bundles_post_ra>
